<compile_context>
chip_gen: v6e
topology: v6e:2x2x1
jax: 0.10.0
libtpu: 0.0.40
codegen_flags: <defaults>
</compile_context>

<pallas_src>
import functools
import math

import jax
import jax.numpy as jnp
from jax.experimental import pallas as pl
from jax.experimental.pallas import tpu as pltpu

_NEG_LOG_1E4 = -math.log(1e-4)   # = 9.210340371976184


def _sce_kernel(pred_ref, labels_ref, out_ref, acc_ref, *,
                alpha, beta, n_valid, covered_rows, tile_n, inner_tiles,
                num_cores):
    if num_cores > 1:
        core = pl.program_id(0)      # CORE_PARALLEL axis (v7x megacore split)
        step = pl.program_id(1)      # "arbitrary" reduction axis over row tiles
        step_axis = 1
    else:
        core = 0
        step = pl.program_id(0)
        step_axis = 0

    @pl.when(step == 0)
    def _init():
        acc_ref[...] = jnp.zeros_like(acc_ref)

    pred = pred_ref[...].astype(jnp.float32)       # (tn, C) logits
    labels = labels_ref[...]                       # (tn, 1) int32
    tn, c = pred.shape

    # Label column select via lane-axis iota compare (no float one_hot).
    col_ids = jax.lax.broadcasted_iota(jnp.int32, (tn, c), 1)
    is_label = col_ids == labels                   # bool (tn, C)

    # ----- softmax pieces: single full-tile exp pass (EUP) -----
    row_max = jnp.max(pred, axis=1, keepdims=True)             # (tn, 1)
    shifted = pred - row_max                                    # (tn, C)
    e = jnp.exp(shifted)                                        # only full-tile transcendental
    s = jnp.sum(e, axis=1, keepdims=True)                       # (tn, 1)
    lse = jnp.log(s)                                            # (tn, 1)
    recip_s = pl.reciprocal(s, approx=False)                    # (tn, 1)

    # shifted logit at the label column: one select + one lane reduce.
    shifted_label = jnp.sum(jnp.where(is_label, shifted, 0.0),
                            axis=1, keepdims=True)              # (tn, 1)

    # ----- cross entropy:  ce = lse - shifted[label] -----
    ce_rows = lse - shifted_label                               # (tn, 1)

    # ----- reverse cross entropy, algebraic form -----
    # log(clip(one_hot,1e-4,1)) is 0 at the label and log(1e-4) elsewhere, so
    # rce = -log(1e-4) * (sum_c clip(p)_c - clip(p)_label).
    probs_cl = jnp.maximum(e * recip_s, 1e-7)                   # (tn, C)
    sum_cl = jnp.sum(probs_cl, axis=1, keepdims=True)           # (tn, 1)
    p_label = jnp.clip(jnp.exp(shifted_label) * recip_s, 1e-7, 1.0)   # (tn, 1)
    rce_rows = _NEG_LOG_1E4 * (sum_cl - p_label)                # (tn, 1)

    contrib = alpha * ce_rows + beta * rce_rows                 # (tn, 1)

    if covered_rows > n_valid:
        # Mask ragged tail rows (reads past the array end are undefined) BEFORE
        # any cross-row reduction so garbage / NaNs cannot leak.
        row_start = (core * inner_tiles + step) * tile_n
        row_ids = row_start + jax.lax.broadcasted_iota(jnp.int32, (tn, 1), 0)
        contrib = jnp.where(row_ids < n_valid, contrib, 0.0)

    acc_ref[...] += jnp.sum(contrib, axis=0, keepdims=True)     # (1, 1) running sum

    @pl.when(step == pl.num_programs(step_axis) - 1)
    def _finalize():
        out_ref[...] = jnp.broadcast_to(acc_ref[...], out_ref.shape)


def _round_up(x, m):
    return ((x + m - 1) // m) * m


def _device_config():
    """Returns (num_tensorcores, f32 tile byte budget, scoped VMEM limit)."""
    kind = ""
    try:
        kind = jax.devices()[0].device_kind.lower()
    except Exception:
        pass
    if "v7" in kind or "7x" in kind:
        # v7x: 2 TCs per chip, 64 MiB VMEM per TC -> modest tile, 40 MiB scoped.
        return 2, 2 * 1024 * 1024, 40 * 1024 * 1024
    # v5e / v6e (or unknown): 1 TC, 128 MiB VMEM.
    return 1, 4 * 1024 * 1024, 64 * 1024 * 1024


def sce_loss(pred, labels, *, alpha, beta, num_classes, max_tile_rows=8192):
    """pred: (N, C) float logits (f32 or bf16), labels: (N,) ints -> scalar f32 loss."""
    n, c = pred.shape
    assert c == num_classes, (c, num_classes)

    num_cores, tile_budget, vmem_limit = _device_config()
    if num_cores > 1 and n < 16 * num_cores:
        num_cores = 1                              # tiny batch: don't split cores

    # VMEM layout pads the lane (class) axis to 128, so budget rows against that
    # (HBM traffic is still only n*C elements since we no longer pad in HBM).
    c_layout = _round_up(c, 128)
    rows_per_core = _round_up(pl.cdiv(n, num_cores), 8)
    tn_budget = max(8, (tile_budget // (c_layout * 4)) // 8 * 8)
    tn = max(8, min(tn_budget, max_tile_rows, rows_per_core))
    inner = pl.cdiv(rows_per_core, tn)
    covered = num_cores * inner * tn               # rows spanned by the grid

    labels2d = labels.astype(jnp.int32).reshape(n, 1)

    kernel = functools.partial(
        _sce_kernel, alpha=float(alpha), beta=float(beta),
        n_valid=n, covered_rows=covered, tile_n=tn, inner_tiles=inner,
        num_cores=num_cores)

    if num_cores > 1:
        grid = (num_cores, inner)
        pred_spec = pl.BlockSpec((tn, c), lambda cc, i: (cc * inner + i, 0))
        lab_spec = pl.BlockSpec((tn, 1), lambda cc, i: (cc * inner + i, 0))
        out_spec = pl.BlockSpec((8, 128), lambda cc, i: (cc, 0))
        dims = (pltpu.CORE_PARALLEL, pltpu.ARBITRARY)
    else:
        grid = (inner,)
        pred_spec = pl.BlockSpec((tn, c), lambda i: (i, 0))
        lab_spec = pl.BlockSpec((tn, 1), lambda i: (i, 0))
        out_spec = pl.BlockSpec((8, 128), lambda i: (0, 0))
        dims = (pltpu.ARBITRARY,)

    out = pl.pallas_call(
        kernel,
        out_shape=jax.ShapeDtypeStruct((num_cores * 8, 128), jnp.float32),
        grid_spec=pltpu.PrefetchScalarGridSpec(
            num_scalar_prefetch=0,
            grid=grid,
            in_specs=[pred_spec, lab_spec],
            out_specs=out_spec,
            scratch_shapes=[pltpu.VMEM((1, 1), jnp.float32)],
        ),
        compiler_params=pltpu.CompilerParams(
            dimension_semantics=dims,
            vmem_limit_bytes=vmem_limit),
    )(pred, labels2d)

    partials = out[0::8, 0]                        # one partial sum per core
    return jnp.sum(partials) / n                   # normalize by the true N once


def sce_loss_ref(pred, labels, *, alpha, beta, num_classes):
    """Pure-JAX reference matching the PyTorch module."""
    logp = jax.nn.log_softmax(pred.astype(jnp.float32), axis=1)
    one_hot = jax.nn.one_hot(labels, num_classes, dtype=jnp.float32)
    ce = jnp.mean(-jnp.sum(one_hot * logp, axis=1))
    probs = jnp.clip(jnp.exp(logp), 1e-7, 1.0)
    label_one_hot = jnp.clip(one_hot, 1e-4, 1.0)
    rce = -jnp.sum(probs * jnp.log(label_one_hot), axis=1)
    return alpha * ce + beta * jnp.mean(rce)


if __name__ == "__main__":
    key = jax.random.PRNGKey(0)
    k1, k2, k3, k4 = jax.random.split(key, 4)

    ALPHA, BETA = 0.1, 1.0

    # Small case matching the module default (num_classes=10).
    N, C = 8, 10
    pred = jax.random.normal(k1, (N, C), dtype=jnp.float32) * 3.0
    labels = jax.random.randint(k2, (N,), 0, C, dtype=jnp.int32)
    loss = jax.block_until_ready(
        sce_loss(pred, labels, alpha=ALPHA, beta=BETA, num_classes=C))
    ref = sce_loss_ref(pred, labels, alpha=ALPHA, beta=BETA, num_classes=C)
    assert jnp.allclose(loss, ref, rtol=1e-4, atol=1e-4), (loss, ref)

    # Multi-tile case: exercises the reduction grid (inner > 1), ragged tail-row
    # masking (257 is not a tile multiple) and the unpadded small class axis.
    N2, C2 = 257, 10
    pred2 = jax.random.normal(k3, (N2, C2), dtype=jnp.float32) * 3.0
    labels2 = jax.random.randint(k4, (N2,), 0, C2, dtype=jnp.int32)
    loss2 = jax.block_until_ready(
        sce_loss(pred2, labels2, alpha=ALPHA, beta=BETA, num_classes=C2,
                 max_tile_rows=64))
    ref2 = sce_loss_ref(pred2, labels2, alpha=ALPHA, beta=BETA, num_classes=C2)
    assert jnp.allclose(loss2, ref2, rtol=1e-4, atol=1e-4), (loss2, ref2)

    print("KERNEL_OK")
</pallas_src>

<mosaic_0001>
module attributes {stable_mosaic.version = 11 : i64} {
  func.func @_sce_kernel(%arg0: i32, %arg1: memref<8x10xf32, #tpu.memory_space<vmem>>, %arg2: memref<8x1xi32, #tpu.memory_space<vmem>>, %arg3: memref<8x128xf32, #tpu.memory_space<vmem>>, %arg4: memref<1x1xf32, #tpu.memory_space<vmem>>) attributes {dimension_semantics = [#tpu.dimension_semantics<arbitrary>], iteration_bounds = array<i64: 1>, scalar_prefetch = 0 : i64, scratch_operands = 1 : i64, tpu.core_type = #tpu.core_type<tc>, window_params = [{transform_indices = @transform_0, window_bounds = array<i64: 8, 10>}, {transform_indices = @transform_1, window_bounds = array<i64: 8, 1>}, {pipeline_mode = #tpu.pipeline_mode<synchronous>, transform_indices = @transform_2, window_bounds = array<i64: 8, 128>}]} {
    %c0_i32 = arith.constant 0 : i32
    %0 = arith.cmpi eq, %arg0, %c0_i32 : i32
    %1 = arith.extui %0 : i1 to i32
    %c0_i32_0 = arith.constant 0 : i32
    %2 = arith.cmpi ne, %1, %c0_i32_0 : i32
    scf.if %2 {
      %cst_21 = arith.constant 0.000000e+00 : f32
      %50 = vector.broadcast %cst_21 : f32 to vector<1x1xf32>
      %c0_22 = arith.constant 0 : index
      %c0_23 = arith.constant 0 : index
      %51 = vector.load %arg4[%c0_22, %c0_23] : memref<1x1xf32, #tpu.memory_space<vmem>>, vector<1x1xf32>
      tpu.vector_store %arg4[%c0_22, %c0_23], %50 {strides = array<i32>} : memref<1x1xf32, #tpu.memory_space<vmem>>, vector<1x1xf32>,
    } else {
    }
    %c0 = arith.constant 0 : index
    %c0_1 = arith.constant 0 : index
    %3 = vector.load %arg1[%c0, %c0_1] : memref<8x10xf32, #tpu.memory_space<vmem>>, vector<8x10xf32>
    %c0_2 = arith.constant 0 : index
    %c0_3 = arith.constant 0 : index
    %4 = vector.load %arg2[%c0_2, %c0_3] : memref<8x1xi32, #tpu.memory_space<vmem>>, vector<8x1xi32>
    %5 = tpu.iota {dimensions = array<i32: 1>} : vector<8x10xi32>
    %6 = vector.broadcast %4 : vector<8x1xi32> to vector<8x10xi32>
    %7 = arith.cmpi eq, %5, %6 : vector<8x10xi32>
    %cst = arith.constant dense<0xFF800000> : vector<8xf32>
    %8 = vector.multi_reduction <maximumf>, %3, %cst [1] : vector<8x10xf32> to vector<8xf32>
    %9 = vector.shape_cast %8 : vector<8xf32> to vector<8x1xf32>
    %10 = vector.broadcast %9 : vector<8x1xf32> to vector<8x10xf32>
    %11 = arith.subf %3, %10 : vector<8x10xf32>
    %12 = math.exp %11 : vector<8x10xf32>
    %cst_4 = arith.constant dense<0.000000e+00> : vector<8xf32>
    %13 = vector.multi_reduction <add>, %12, %cst_4 [1] : vector<8x10xf32> to vector<8xf32>
    %14 = vector.shape_cast %13 : vector<8xf32> to vector<8x1xf32>
    %15 = math.log %14 : vector<8x1xf32>
    %16 = tpu.reciprocal %14 : vector<8x1xf32> -> vector<8x1xf32>
    %cst_5 = arith.constant 0.000000e+00 : f32
    %17 = vector.broadcast %cst_5 : f32 to vector<8x10xf32>
    %18 = arith.select %7, %11, %17 : vector<8x10xi1>, vector<8x10xf32>
    %cst_6 = arith.constant dense<0.000000e+00> : vector<8xf32>
    %19 = vector.multi_reduction <add>, %18, %cst_6 [1] : vector<8x10xf32> to vector<8xf32>
    %20 = vector.shape_cast %19 : vector<8xf32> to vector<8x1xf32>
    %21 = arith.subf %15, %20 : vector<8x1xf32>
    %22 = vector.broadcast %16 : vector<8x1xf32> to vector<8x10xf32>
    %23 = arith.mulf %12, %22 : vector<8x10xf32>
    %cst_7 = arith.constant 1.000000e-07 : f32
    %24 = vector.broadcast %cst_7 : f32 to vector<8x10xf32>
    %25 = arith.maximumf %23, %24 : vector<8x10xf32>
    %cst_8 = arith.constant dense<0.000000e+00> : vector<8xf32>
    %26 = vector.multi_reduction <add>, %25, %cst_8 [1] : vector<8x10xf32> to vector<8xf32>
    %27 = vector.shape_cast %26 : vector<8xf32> to vector<8x1xf32>
    %28 = math.exp %20 : vector<8x1xf32>
    %29 = arith.mulf %28, %16 : vector<8x1xf32>
    %cst_9 = arith.constant 1.000000e-07 : f32
    %cst_10 = arith.constant 1.000000e+00 : f32
    %30 = vector.broadcast %cst_9 : f32 to vector<8x1xf32>
    %31 = arith.maximumf %30, %29 : vector<8x1xf32>
    %32 = vector.broadcast %cst_10 : f32 to vector<8x1xf32>
    %33 = arith.minimumf %32, %31 : vector<8x1xf32>
    %34 = arith.subf %27, %33 : vector<8x1xf32>
    %cst_11 = arith.constant 9.21034049 : f32
    %35 = vector.broadcast %cst_11 : f32 to vector<8x1xf32>
    %36 = arith.mulf %35, %34 : vector<8x1xf32>
    %cst_12 = arith.constant 1.000000e-01 : f32
    %37 = vector.broadcast %cst_12 : f32 to vector<8x1xf32>
    %38 = arith.mulf %37, %21 : vector<8x1xf32>
    %cst_13 = arith.constant 1.000000e+00 : f32
    %39 = vector.broadcast %cst_13 : f32 to vector<8x1xf32>
    %40 = arith.mulf %39, %36 : vector<8x1xf32>
    %41 = arith.addf %38, %40 : vector<8x1xf32>
    %c0_14 = arith.constant 0 : index
    %c0_15 = arith.constant 0 : index
    %42 = vector.load %arg4[%c0_14, %c0_15] : memref<1x1xf32, #tpu.memory_space<vmem>>, vector<1x1xf32>
    %cst_16 = arith.constant dense<0.000000e+00> : vector<1xf32>
    %43 = vector.multi_reduction <add>, %41, %cst_16 [0] : vector<8x1xf32> to vector<1xf32>
    %44 = vector.shape_cast %43 : vector<1xf32> to vector<1x1xf32>
    %45 = arith.addf %42, %44 : vector<1x1xf32>
    %c0_17 = arith.constant 0 : index
    %c0_18 = arith.constant 0 : index
    %46 = vector.load %arg4[%c0_17, %c0_18] : memref<1x1xf32, #tpu.memory_space<vmem>>, vector<1x1xf32>
    tpu.vector_store %arg4[%c0_17, %c0_18], %45 {strides = array<i32>} : memref<1x1xf32, #tpu.memory_space<vmem>>, vector<1x1xf32>,
    %c0_i32_19 = arith.constant 0 : i32
    %47 = arith.cmpi eq, %arg0, %c0_i32_19 : i32
    %48 = arith.extui %47 : i1 to i32
    %c0_i32_20 = arith.constant 0 : i32
    %49 = arith.cmpi ne, %48, %c0_i32_20 : i32
    scf.if %49 {
      %c0_21 = arith.constant 0 : index
      %c0_22 = arith.constant 0 : index
      %50 = vector.load %arg4[%c0_21, %c0_22] : memref<1x1xf32, #tpu.memory_space<vmem>>, vector<1x1xf32>
      %51 = vector.shape_cast %50 : vector<1x1xf32> to vector<1x1xf32>
      %52 = vector.broadcast %51 : vector<1x1xf32> to vector<8x128xf32>
      %c0_23 = arith.constant 0 : index
      %c0_24 = arith.constant 0 : index
      %53 = vector.load %arg3[%c0_23, %c0_24] : memref<8x128xf32, #tpu.memory_space<vmem>>, vector<8x128xf32>
      tpu.vector_store %arg3[%c0_23, %c0_24], %52 {strides = array<i32>} : memref<8x128xf32, #tpu.memory_space<vmem>>, vector<8x128xf32>,
    } else {
    }
    return
  }
  func.func @transform_0(%arg0: i32) -> (i32, i32) {
    %c0_i32 = arith.constant 0 : i32
    %c0_i32_0 = arith.constant 0 : i32
    return %arg0, %c0_i32 : i32, i32
  }
  func.func @transform_1(%arg0: i32) -> (i32, i32) {
    %c0_i32 = arith.constant 0 : i32
    %c0_i32_0 = arith.constant 0 : i32
    return %arg0, %c0_i32 : i32, i32
  }
  func.func @transform_2(%arg0: i32) -> (i32, i32) {
    %c0_i32 = arith.constant 0 : i32
    %c0_i32_0 = arith.constant 0 : i32
    %c0_i32_1 = arith.constant 0 : i32
    return %c0_i32, %c0_i32_0 : i32, i32
  }
}

</mosaic_0001>

<bundles_post_ra>
// kernel: tpu_custom_call.1
= control target key start
LH: loop header
LB: loop body
LE: loop exit
PB: predicated region body
PF: predicated region fallthrough
CT: control target
= control target key end

     0   :  { %vm26_vm0 = vcmask 80896   ;;  %s165_s0 = inlined_call_operand.vmem [shape: f32[8,10], index: 0, kind: input, shape index: {}]   ;;  %s166_s1 = inlined_call_operand.vmem [shape: s32[8,1], index: 1, kind: input, shape index: {}]   ;;  %s167_s2 = inlined_call_operand.hbm [shape: f32[8,128], index: 2, kind: output, shape index: {}]  }
   0x1   :  { %v18_v0 = vld [vmem:[%s165_s0] sm:$0xff] }
   0x2   :  { %v19_v1 = vld [vmem:[%s166_s1] sm:$0xff] }
   0x3   :  { %7 = vsyncpa [#allocation4], 0  ;;  %v27_v2 = vsel %vm26_vm0, %v18_v0, -inf  ;;  %v132_v3 = vmov 0   ;;  %v20_v4 = vlaneseq  ;;  %vm16_vm2 = vcmask 0   ;;  %s134_s0 = smov [#allocation3]  }
   0x4   :  { %100 = vset.pattern.permute.xlu1 %v132_v3  ;;  %101 = vset.pattern.permute.xlu0 %v132_v3  ;;  %v133_v19 = vmov 0.0   ;;  %s88_s1 = sshll.u32 %s134_s0, 4  ;;  %s89_s1 = int_to_ptr.vmem [resolvable:$true] %s88_s1 }
   0x5   :  { %28 = vmax.xlane.f32.xlu0 %v27_v2  ;;  %23 = vperm.xlu1 %100, %v19_v1   ;;  %v21_v5 = vand.u32 127, %v20_v4  ;;  %17 = vst.msk [vmem:[#allocation2] sm:$0x1] %vm16_vm2, %v133_v19  ;;  %s110_s13 = scalar_lea.vmem %s89_s1, 128  ;;  %p115_p1 = scmp.lt.s32.totalorder %s89_s1, %s89_s1 }
   0x6   :  { %p111_p0 = scmp.ne.s32.totalorder %s89_s1, %s110_s13  ;;  %p116_p2 = scmp.lt.s32.totalorder %s110_s13, %s110_s13 }
   0x8   :  { %p117_p3 = por %p116_p2, %p115_p1 }
   0xa   :  { %p118_p4 = pnand %p117_p3, %p111_p0 }
   0xc   :  { %v58_v39 = vld [vmem:[#allocation2] sm:$0x1] }
  0x80   :  { %v24_v6 = vpop.permute.xlu1 %23 }
  0x81   :  { %vm25_vm1 = vcmp.eq.s32.totalorder %v21_v5, %v24_v6 }
  0x8e   :  { %v29_v7 = vpop.xlane.xlu0 %28 }
  0x8f   :  { %v30_v8 = vsub.f32 %v18_v0, %v29_v7 }
  0x91   :  { %v31_v9 = vmul.f32 1.442695, %v30_v8  ;;  %v39_v10 = vsel %vm25_vm1, %v30_v8, 0.0 }
  0x92   :  { %v40_v11 = vsel %vm26_vm0, %v39_v10, 0.0 }
  0x93   :  { %102 = vpow2.f32 %v31_v9  ;;  %41 = vadd.xlane.f32.xlu1 %v40_v11 }
  0xa0   :  { %v103_v12 = vpop.eup %102 }
  0xa1   :  { %v33_v13 = vsel %vm26_vm0, %v103_v12, 0.0 }
  0xa2   :  { %34 = vadd.xlane.f32.xlu0 %v33_v13 }
 0x11c   :  { %v42_v20 = vpop.xlane.xlu1 %41 }
 0x11d   :  { %v49_v21 = vmul.f32 1.442695, %v42_v20 }
 0x12b   :  { %v35_v14 = vpop.xlane.xlu0 %34 }
 0x12c   :  { %104 = vrcp.f32 %v35_v14 }
 0x12d   :  { %106 = vpow2.f32 %v49_v21 }
 0x12e   :  { %108 = vlog2.f32 %v35_v14 }
 0x139   :  { %v105_v15 = vpop.eup %104 }
 0x13a   :  { %v44_v16 = vmul.f32 %v105_v15, %v103_v12  ;;  %v107_v22 = vpop.eup %106 }
 0x13b   :  { %v51_v23 = vmul.f32 %v107_v22, %v105_v15  ;;  %v109_v24 = vpop.eup %108 }
 0x13c   :  { %v45_v17 = vmax.f32 %v44_v16, 1e-07  ;;  %v37_v25 = vmul.f32 0.6931472, %v109_v24 }
 0x13d   :  { %v52_v26 = vmax.f32 %v51_v23, 1e-07 }
 0x13e   :  { %v46_v18 = vsel %vm26_vm0, %v45_v17, 0.0  ;;  %v43_v28 = vsub.f32 %v37_v25, %v42_v20 }
 0x13f   :  { %47 = vadd.xlane.f32.xlu0 %v46_v18  ;;  %v53_v27 = vmin.f32 %v52_v26, 1.0 }
 0x140   :  { %v56_v32 = vmul.f32 0.1, %v43_v28 }
 0x1c8   :  { %v48_v29 = vpop.xlane.xlu0 %47 }
 0x1c9   :  { %v54_v30 = vsub.f32 %v48_v29, %v53_v27 }
 0x1cb   :  { %v55_v31 = vmul.f32 9.2103405, %v54_v30 }
 0x1cd   :  { %v57_v33 = vadd.f32 %v56_v32, %v55_v31 }
 0x1cf   :  { %v59_v34 = vrot.slane %v57_v33, 4 }
 0x1d1   :  { %v60_v35 = vadd.f32 %v59_v34, %v57_v33 }
 0x1d3   :  { %v61_v36 = vrot.slane %v60_v35, 2 }
 0x1d5   :  { %v62_v37 = vadd.f32 %v61_v36, %v60_v35 }
 0x1d7   :  { %v63_v38 = vrot.slane %v62_v37, 1 }
 0x1d9   :  { %v64_v40 = vadd.f32 %v63_v38, %v62_v37 }
 0x1db   :  { %v65_v41 = vadd.f32 %v64_v40, %v58_v39 }
 0x1dd   :  { %67 = vst.msk [vmem:[#allocation2] sm:$0x1] %vm16_vm2, %v65_v41 }
 0x1e4   :  { %v96_v42 = vld [vmem:[#allocation2] ss:$0 sm:$0xff] }
 0x1e5   :  { %78 = vperm.xlu0 %101, %v96_v42  }
 0x260   :  { %v79_v43 = vpop.permute.xlu0 %78 }
 0x261   :  { %81 = vst [vmem:[#allocation3] sm:$0xff] %v79_v43 }
 0x262   :  { %121 = shalt.err (!%p118_p4)
}
 0x263   :  { %91 = dma.vmem_to_hbm [thread:$0]  %s89_s1, 128, %s167_s2, [#allocation4]  }
 0x264   :  { %130 = dma.done.wait [#allocation4], 128  }
 0x265   :  { %131 = vsyncadd [#allocation4], 4294967168 }
 0x266   :  { %95 = vsyncpa [#allocation4], 1 }

</bundles_post_ra>
